<compile_context>
chip_gen: v7x
topology: tpu7x:2x2x1
jax: 0.10.0
libtpu: 0.0.40
codegen_flags: <defaults>
</compile_context>

<pallas_src>
import jax
import jax.numpy as jnp
from jax import lax
from jax.experimental import pallas as pl
from jax.experimental.pallas import tpu as pltpu

_LOG2E = 1.4426950408889634


def _pick_tile(n, target, aligns=(8,)):
    """Largest divisor of n that is <= target, preferring the given alignments."""
    n = int(n)
    target = int(target)
    if n <= target:
        return n
    for a in aligns:
        d = (target // a) * a
        while d >= a:
            if n % d == 0:
                return int(d)
            d -= a
    for d in range(min(target, n), 0, -1):
        if n % d == 0:
            return int(d)
    return 1


def _qkv_proj_kernel(x1_ref, x2_ref, wq_ref, bq_ref, wkv_ref, bkv_ref,
                     q_ref, *kv_out):
    # x1/x2 block: (TR, C) f32 ; wq: (C, C) bf16 (pre-scaled) ; wkv: (C, 2C) bf16
    C = q_ref.shape[-1]
    x1 = x1_ref[...].astype(jnp.bfloat16)
    x2 = x2_ref[...].astype(jnp.bfloat16)

    q = jnp.dot(x1, wq_ref[...], preferred_element_type=jnp.float32) + bq_ref[...]
    kv = jnp.dot(x2, wkv_ref[...], preferred_element_type=jnp.float32) + bkv_ref[...]

    q_ref[...] = q.astype(q_ref.dtype)
    if len(kv_out) == 1:
        # Lane-dense fused (TR, 2C) store (used when C % 128 == 0).
        kv_out[0][...] = kv.astype(kv_out[0].dtype)
    else:
        # Fallback for C not a multiple of 128: in-kernel column split.
        k_ref, v_ref = kv_out
        k_ref[...] = kv[:, :C].astype(k_ref.dtype)
        v_ref[...] = kv[:, C:].astype(v_ref.dtype)


def _flash_attn_kernel(q_ref, k_ref, v_ref, wp_ref, bp_ref, o_ref,
                       m_sc, l_sc, acc_sc):
    ki = pl.program_id(2)

    @pl.when(ki == 0)
    def _():
        m_sc[...] = jnp.full_like(m_sc, -jnp.inf)
        l_sc[...] = jnp.zeros_like(l_sc)
        acc_sc[...] = jnp.zeros_like(acc_sc)

    q = q_ref[0]        # (TQ, C) bf16, pre-scaled by scale * log2(e)
    k = k_ref[0]        # (TK, C) bf16
    v = v_ref[0]        # (TK, C) bf16

    # NT matmul: contract last dim of both operands (no explicit k transpose).
    # s is already in the log2 domain because log2(e) was folded into q.
    s = lax.dot_general(q, k, (((1,), (1,)), ((), ())),
                        preferred_element_type=jnp.float32)      # (TQ, TK) f32

    # Online softmax via exp2 (statistics kept in f32).
    m_prev = m_sc[...]
    m_new = jnp.maximum(m_prev, jnp.max(s, axis=-1, keepdims=True))
    alpha = jnp.exp2(m_prev - m_new)
    p = jnp.exp2(s - m_new)
    l_sc[...] = alpha * l_sc[...] + jnp.sum(p, axis=-1, keepdims=True)
    acc_sc[...] = alpha * acc_sc[...] + jnp.dot(
        p.astype(jnp.bfloat16), v, preferred_element_type=jnp.float32)
    m_sc[...] = m_new

    @pl.when(ki == pl.num_programs(2) - 1)
    def _():
        x = acc_sc[...] * pl.reciprocal(l_sc[...], approx=True)
        out = jnp.dot(x.astype(jnp.bfloat16), wp_ref[...],
                      preferred_element_type=jnp.float32) + bp_ref[...]
        o_ref[0] = out.astype(o_ref.dtype)
        # TODO(synk): for C < 128 a lane-dense (1, TQ*C) packed output store
        # would avoid masked vst.msk stores, but needs an in-kernel relayout.


def global_attention(fmap1, fmap2, params, scale=None):
    """fmap1, fmap2: (B, H, W, C) float32. Returns (B, H, W, C).

    Implements the mask=None path of GlobalAttention.forward.
    """
    B, H, W, C = fmap1.shape
    N = H * W
    scale = float(scale) if scale is not None else float(C) ** (-0.5)

    bf16 = jnp.bfloat16
    f32 = jnp.float32
    fuse_kv = (C % 128 == 0)

    x1 = fmap1.reshape(B * N, C)
    x2 = fmap2.reshape(B * N, C)

    # PyTorch Linear weight is (out, in); pre-transpose to (in, out) so the
    # kernels compute x @ W_t + b.  Softmax scale and log2(e) (for the exp2
    # online softmax) are folded into the Q weights/bias.  K and V weights are
    # fused into a single (C, 2C) slab.
    qscale = scale * _LOG2E
    wq_t = (params["wq"].T.astype(f32) * qscale).astype(bf16)
    bq = (params["bq"].astype(f32) * qscale).reshape(1, C)
    wkv_t = jnp.concatenate([params["wk"].T, params["wv"].T], axis=1).astype(bf16)
    bkv = jnp.concatenate([params["bk"], params["bv"]]).reshape(1, 2 * C).astype(f32)
    wp_t = params["wp"].T.astype(bf16)
    bp = params["bp"].reshape(1, C).astype(f32)

    vmem_limit = 48 * 1024 * 1024  # <= v7x's 64 MiB physical VMEM

    # ---------------- stage 1: fused QKV projection over all B*N rows -------
    # Row-tile target 1024 (amortizes per-step overhead); keep >=2 steps when
    # possible so both v7x TensorCores get a shard.
    tr_target = min(1024, max(8, (B * N) // 2))
    TR = _pick_tile(B * N, tr_target, aligns=(16, 8))
    nr = (B * N) // TR

    row_spec = pl.BlockSpec((TR, C), lambda r: (r, 0))
    proj_cost = pl.CostEstimate(
        flops=int(2 * B * N * C * 3 * C),
        transcendentals=0,
        bytes_accessed=int(2 * B * N * C * 4 + 3 * C * C * 2 + 3 * C * 4
                           + 3 * B * N * C * 2),
    )

    if fuse_kv:
        stage1_out_shape = [jax.ShapeDtypeStruct((B * N, C), bf16),
                            jax.ShapeDtypeStruct((B * N, 2 * C), bf16)]
        stage1_out_specs = [row_spec, pl.BlockSpec((TR, 2 * C), lambda r: (r, 0))]
    else:
        stage1_out_shape = [jax.ShapeDtypeStruct((B * N, C), bf16)] * 3
        stage1_out_specs = [row_spec, row_spec, row_spec]

    stage1_outs = pl.pallas_call(
        _qkv_proj_kernel,
        out_shape=stage1_out_shape,
        grid_spec=pltpu.PrefetchScalarGridSpec(
            num_scalar_prefetch=0,
            grid=(nr,),
            in_specs=[row_spec, row_spec,
                      pl.BlockSpec((C, C), lambda r: (0, 0)),
                      pl.BlockSpec((1, C), lambda r: (0, 0)),
                      pl.BlockSpec((C, 2 * C), lambda r: (0, 0)),
                      pl.BlockSpec((1, 2 * C), lambda r: (0, 0))],
            out_specs=stage1_out_specs,
        ),
        compiler_params=pltpu.CompilerParams(
            dimension_semantics=("parallel",),
            vmem_limit_bytes=vmem_limit),
        cost_estimate=proj_cost,
    )(x1, x2, wq_t, bq, wkv_t, bkv)

    # ---------------- stage 2: flash attention + fused output projection ----
    TQ = _pick_tile(N, 512, aligns=(16, 8))
    TK = _pick_tile(N, 512, aligns=(128, 16, 8))
    nq = N // TQ
    nk = N // TK

    if fuse_kv:
        q, kv = stage1_outs
        q = q.reshape(B, N, C)
        kv = kv.reshape(B, N, 2 * C)
        k_arr, v_arr = kv, kv
        # K = column block 0, V = column block 1 of the fused (B, N, 2C) array.
        k_spec = pl.BlockSpec((1, TK, C), lambda b, qi, ki: (b, ki, 0))
        v_spec = pl.BlockSpec((1, TK, C), lambda b, qi, ki: (b, ki, 1))
    else:
        q, k_arr, v_arr = stage1_outs
        q = q.reshape(B, N, C)
        k_arr = k_arr.reshape(B, N, C)
        v_arr = v_arr.reshape(B, N, C)
        k_spec = pl.BlockSpec((1, TK, C), lambda b, qi, ki: (b, ki, 0))
        v_spec = pl.BlockSpec((1, TK, C), lambda b, qi, ki: (b, ki, 0))

    attn_cost = pl.CostEstimate(
        flops=int(B * (4 * N * N * C + 2 * N * C * C)),
        transcendentals=int(B * N * N + B * N * nk),
        # q read once, K/V re-streamed once per q-tile, output written once.
        bytes_accessed=int(B * N * C * 2 + 2 * B * N * C * 2 * nq
                           + B * N * C * 4 + C * C * 2 + C * 4),
    )

    out = pl.pallas_call(
        _flash_attn_kernel,
        out_shape=jax.ShapeDtypeStruct((B, N, C), fmap1.dtype),
        grid_spec=pltpu.PrefetchScalarGridSpec(
            num_scalar_prefetch=0,
            grid=(B, nq, nk),
            in_specs=[pl.BlockSpec((1, TQ, C), lambda b, qi, ki: (b, qi, 0)),
                      k_spec,
                      v_spec,
                      pl.BlockSpec((C, C), lambda b, qi, ki: (0, 0)),
                      pl.BlockSpec((1, C), lambda b, qi, ki: (0, 0))],
            out_specs=pl.BlockSpec((1, TQ, C), lambda b, qi, ki: (b, qi, 0)),
            scratch_shapes=[pltpu.VMEM((TQ, 1), jnp.float32),
                            pltpu.VMEM((TQ, 1), jnp.float32),
                            pltpu.VMEM((TQ, C), jnp.float32)],
        ),
        compiler_params=pltpu.CompilerParams(
            dimension_semantics=("parallel", "parallel", "arbitrary"),
            vmem_limit_bytes=vmem_limit),
        cost_estimate=attn_cost,
    )(q, k_arr, v_arr, wp_t, bp)

    return out.reshape(B, H, W, C)


def _reference(fmap1, fmap2, params, scale):
    B, H, W, C = fmap1.shape
    N = H * W

    def lin(x, w, b):
        return x @ w.T + b

    q = lin(fmap1, params["wq"], params["bq"]).reshape(B, N, C)
    k = lin(fmap2, params["wk"], params["bk"]).reshape(B, N, C)
    v = lin(fmap2, params["wv"], params["bv"]).reshape(B, N, C)
    q = q * scale
    attn = jax.nn.softmax(jnp.einsum("bnc,bmc->bnm", q, k), axis=-1)
    x = jnp.einsum("bnm,bmc->bnc", attn, v)
    x = lin(x, params["wp"], params["bp"])
    return x.reshape(B, H, W, C)


if __name__ == "__main__":
    B, H, W, C = 2, 8, 8, 32
    scale = C ** (-0.5)

    key = jax.random.PRNGKey(0)
    keys = jax.random.split(key, 10)

    fmap1 = jax.random.normal(keys[0], (B, H, W, C), dtype=jnp.float32)
    fmap2 = jax.random.normal(keys[1], (B, H, W, C), dtype=jnp.float32)

    def init_linear(kw, kb, dim):
        bound = dim ** (-0.5)
        w = jax.random.uniform(kw, (dim, dim), jnp.float32, -bound, bound)
        b = jax.random.uniform(kb, (dim,), jnp.float32, -bound, bound)
        return w, b

    wq, bq = init_linear(keys[2], keys[3], C)
    wk, bk = init_linear(keys[4], keys[5], C)
    wv, bv = init_linear(keys[6], keys[7], C)
    wp, bp = init_linear(keys[8], keys[9], C)

    params = dict(wq=wq, bq=bq, wk=wk, bk=bk, wv=wv, bv=bv, wp=wp, bp=bp)

    out = global_attention(fmap1, fmap2, params, scale=scale)
    out = jax.block_until_ready(out)

    ref = _reference(fmap1, fmap2, params, scale)
    assert out.shape == (B, H, W, C)
    max_err = float(jnp.max(jnp.abs(out.astype(jnp.float32) - ref)))
    # bf16 MXU operands with f32 accumulation: tolerance loosened vs pure f32.
    assert max_err < 5e-2, f"mismatch vs reference (max abs err {max_err})"

    print("KERNEL_OK")
</pallas_src>

<mosaic_0001>
module attributes {stable_mosaic.version = 11 : i64} {
  func.func @_qkv_proj_kernel(%arg0: i32, %arg1: memref<64x32xf32, #tpu.memory_space<vmem>>, %arg2: memref<64x32xf32, #tpu.memory_space<vmem>>, %arg3: memref<32x32xbf16, #tpu.memory_space<vmem>>, %arg4: memref<1x32xf32, #tpu.memory_space<vmem>>, %arg5: memref<32x64xbf16, #tpu.memory_space<vmem>>, %arg6: memref<1x64xf32, #tpu.memory_space<vmem>>, %arg7: memref<64x32xbf16, #tpu.memory_space<vmem>>, %arg8: memref<64x32xbf16, #tpu.memory_space<vmem>>, %arg9: memref<64x32xbf16, #tpu.memory_space<vmem>>) attributes {dimension_semantics = [#tpu.dimension_semantics<parallel>], iteration_bounds = array<i64: 2>, scalar_prefetch = 0 : i64, scratch_operands = 0 : i64, tpu.core_type = #tpu.core_type<tc>, window_params = [{transform_indices = @transform_0, window_bounds = array<i64: 64, 32>}, {transform_indices = @transform_1, window_bounds = array<i64: 64, 32>}, {pipeline_mode = #tpu.pipeline_mode<synchronous>, transform_indices = @transform_2, window_bounds = array<i64: 32, 32>}, {pipeline_mode = #tpu.pipeline_mode<synchronous>, transform_indices = @transform_3, window_bounds = array<i64: 1, 32>}, {pipeline_mode = #tpu.pipeline_mode<synchronous>, transform_indices = @transform_4, window_bounds = array<i64: 32, 64>}, {pipeline_mode = #tpu.pipeline_mode<synchronous>, transform_indices = @transform_5, window_bounds = array<i64: 1, 64>}, {transform_indices = @transform_6, window_bounds = array<i64: 64, 32>}, {transform_indices = @transform_7, window_bounds = array<i64: 64, 32>}, {transform_indices = @transform_8, window_bounds = array<i64: 64, 32>}]} {
    %c0 = arith.constant 0 : index
    %c0_0 = arith.constant 0 : index
    %0 = vector.load %arg1[%c0, %c0_0] : memref<64x32xf32, #tpu.memory_space<vmem>>, vector<64x32xf32>
    %1 = arith.truncf %0 : vector<64x32xf32> to vector<64x32xbf16>
    %c0_1 = arith.constant 0 : index
    %c0_2 = arith.constant 0 : index
    %2 = vector.load %arg2[%c0_1, %c0_2] : memref<64x32xf32, #tpu.memory_space<vmem>>, vector<64x32xf32>
    %3 = arith.truncf %2 : vector<64x32xf32> to vector<64x32xbf16>
    %c0_3 = arith.constant 0 : index
    %c0_4 = arith.constant 0 : index
    %4 = vector.load %arg3[%c0_3, %c0_4] : memref<32x32xbf16, #tpu.memory_space<vmem>>, vector<32x32xbf16>
    %cst = arith.constant dense<0.000000e+00> : vector<64x32xf32>
    %5 = tpu.matmul %1, %4, %cst {dimension_numbers = #tpu.dot_dimension_numbers<[1], [0], [0], [1], [0, 0, 1, 1], [], []>} : vector<64x32xbf16>, vector<32x32xbf16>, vector<64x32xf32> -> vector<64x32xf32>
    %c0_5 = arith.constant 0 : index
    %c0_6 = arith.constant 0 : index
    %6 = vector.load %arg4[%c0_5, %c0_6] : memref<1x32xf32, #tpu.memory_space<vmem>>, vector<1x32xf32>
    %7 = vector.broadcast %6 : vector<1x32xf32> to vector<64x32xf32>
    %8 = arith.addf %5, %7 : vector<64x32xf32>
    %c0_7 = arith.constant 0 : index
    %c0_8 = arith.constant 0 : index
    %9 = vector.load %arg5[%c0_7, %c0_8] : memref<32x64xbf16, #tpu.memory_space<vmem>>, vector<32x64xbf16>
    %cst_9 = arith.constant dense<0.000000e+00> : vector<64x64xf32>
    %10 = tpu.matmul %3, %9, %cst_9 {dimension_numbers = #tpu.dot_dimension_numbers<[1], [0], [0], [1], [0, 0, 1, 1], [], []>} : vector<64x32xbf16>, vector<32x64xbf16>, vector<64x64xf32> -> vector<64x64xf32>
    %c0_10 = arith.constant 0 : index
    %c0_11 = arith.constant 0 : index
    %11 = vector.load %arg6[%c0_10, %c0_11] : memref<1x64xf32, #tpu.memory_space<vmem>>, vector<1x64xf32>
    %12 = vector.broadcast %11 : vector<1x64xf32> to vector<64x64xf32>
    %13 = arith.addf %10, %12 : vector<64x64xf32>
    %14 = arith.truncf %8 : vector<64x32xf32> to vector<64x32xbf16>
    %c0_12 = arith.constant 0 : index
    %c0_13 = arith.constant 0 : index
    %15 = vector.load %arg7[%c0_12, %c0_13] : memref<64x32xbf16, #tpu.memory_space<vmem>>, vector<64x32xbf16>
    tpu.vector_store %arg7[%c0_12, %c0_13], %14 {strides = array<i32>} : memref<64x32xbf16, #tpu.memory_space<vmem>>, vector<64x32xbf16>,
    %16 = vector.extract_strided_slice %13 {offsets = [0, 0], sizes = [64, 32], strides = [1, 1]} : vector<64x64xf32> to vector<64x32xf32>
    %17 = arith.truncf %16 : vector<64x32xf32> to vector<64x32xbf16>
    %c0_14 = arith.constant 0 : index
    %c0_15 = arith.constant 0 : index
    %18 = vector.load %arg8[%c0_14, %c0_15] : memref<64x32xbf16, #tpu.memory_space<vmem>>, vector<64x32xbf16>
    tpu.vector_store %arg8[%c0_14, %c0_15], %17 {strides = array<i32>} : memref<64x32xbf16, #tpu.memory_space<vmem>>, vector<64x32xbf16>,
    %19 = vector.extract_strided_slice %13 {offsets = [0, 32], sizes = [64, 32], strides = [1, 1]} : vector<64x64xf32> to vector<64x32xf32>
    %20 = arith.truncf %19 : vector<64x32xf32> to vector<64x32xbf16>
    %c0_16 = arith.constant 0 : index
    %c0_17 = arith.constant 0 : index
    %21 = vector.load %arg9[%c0_16, %c0_17] : memref<64x32xbf16, #tpu.memory_space<vmem>>, vector<64x32xbf16>
    tpu.vector_store %arg9[%c0_16, %c0_17], %20 {strides = array<i32>} : memref<64x32xbf16, #tpu.memory_space<vmem>>, vector<64x32xbf16>,
    return
  }
  func.func @transform_0(%arg0: i32) -> (i32, i32) {
    %c0_i32 = arith.constant 0 : i32
    %c0_i32_0 = arith.constant 0 : i32
    return %arg0, %c0_i32 : i32, i32
  }
  func.func @transform_1(%arg0: i32) -> (i32, i32) {
    %c0_i32 = arith.constant 0 : i32
    %c0_i32_0 = arith.constant 0 : i32
    return %arg0, %c0_i32 : i32, i32
  }
  func.func @transform_2(%arg0: i32) -> (i32, i32) {
    %c0_i32 = arith.constant 0 : i32
    %c0_i32_0 = arith.constant 0 : i32
    %c0_i32_1 = arith.constant 0 : i32
    return %c0_i32, %c0_i32_0 : i32, i32
  }
  func.func @transform_3(%arg0: i32) -> (i32, i32) {
    %c0_i32 = arith.constant 0 : i32
    %c0_i32_0 = arith.constant 0 : i32
    %c0_i32_1 = arith.constant 0 : i32
    return %c0_i32, %c0_i32_0 : i32, i32
  }
  func.func @transform_4(%arg0: i32) -> (i32, i32) {
    %c0_i32 = arith.constant 0 : i32
    %c0_i32_0 = arith.constant 0 : i32
    %c0_i32_1 = arith.constant 0 : i32
    return %c0_i32, %c0_i32_0 : i32, i32
  }
  func.func @transform_5(%arg0: i32) -> (i32, i32) {
    %c0_i32 = arith.constant 0 : i32
    %c0_i32_0 = arith.constant 0 : i32
    %c0_i32_1 = arith.constant 0 : i32
    return %c0_i32, %c0_i32_0 : i32, i32
  }
  func.func @transform_6(%arg0: i32) -> (i32, i32) {
    %c0_i32 = arith.constant 0 : i32
    %c0_i32_0 = arith.constant 0 : i32
    return %arg0, %c0_i32 : i32, i32
  }
  func.func @transform_7(%arg0: i32) -> (i32, i32) {
    %c0_i32 = arith.constant 0 : i32
    %c0_i32_0 = arith.constant 0 : i32
    return %arg0, %c0_i32 : i32, i32
  }
  func.func @transform_8(%arg0: i32) -> (i32, i32) {
    %c0_i32 = arith.constant 0 : i32
    %c0_i32_0 = arith.constant 0 : i32
    return %arg0, %c0_i32 : i32, i32
  }
}

</mosaic_0001>

<bundles_post_ra>
// kernel: tpu_custom_call.1
= control target key start
LH: loop header
LB: loop body
LE: loop exit
PB: predicated region body
PF: predicated region fallthrough
CT: control target
= control target key end

     0   :  { %s999_s27 = smov 0   ;;  %s1132_s0 = inlined_call_operand.vmem [shape: f32[128,32], index: 0, kind: input, shape index: {}]   ;;  %s1133_s1 = inlined_call_operand.vmem [shape: f32[128,32], index: 1, kind: input, shape index: {}]   ;;  %s1134_s2 = inlined_call_operand.vmem [shape: bf16[32,32], index: 2, kind: input, shape index: {}]   ;;  %s1135_s3 = inlined_call_operand.vmem [shape: f32[1,32], index: 3, kind: input, shape index: {}]   ;;  %s1136_s4 = inlined_call_operand.vmem [shape: bf16[32,64], index: 4, kind: input, shape index: {}]   ;;  %s1137_s5 = inlined_call_operand.vmem [shape: f32[1,64], index: 5, kind: input, shape index: {}]   ;;  %s1138_s6 = inlined_call_operand.vmem [shape: bf16[128,32], index: 6, kind: output, shape index: {0}]   ;;  %s1139_s7 = inlined_call_operand.vmem [shape: bf16[128,32], index: 7, kind: output, shape index: {1}]   ;;  %s1140_s8 = inlined_call_operand.vmem [shape: bf16[128,32], index: 8, kind: output, shape index: {2}]  }
   0x1 LB: > { %s833_s28 = sadd.s32 4294967295, %s951_s27   ;;  %p837_p0 = scmp.ge.s32.totalorder %s951_s27, 1  ;;  %s951_s27 = sphi %s999_s27, %s19_s27  }
   0x2   : > { %p279_p1 = scmp.lt.s32.totalorder %s951_s27, 3 }
   0x4   : > { %p280_p2 = pnand %p837_p0, %p279_p1 }
   0x5   : > { %v941_v0 = vld [vmem:[%s1136_s4] sm:$0xff] (!%p280_p2)   ;;  %s838_s9 = sshll.u32 (!%p280_p2), %s833_s28, 3  ;;  %v942_v1 = vld [vmem:[%s1136_s4 + $0x8] sm:$0xff] (!%p280_p2)   ;;  %vm406_vm0 = vcmask (!%p280_p2), 261120   ;;  %vm616_vm1 = vcmask (!%p280_p2), 257024  }
   0x6   : > { %283 = sbr.rel (%p280_p2) target bundleno = 367 (0x16f), region = 44  ;;  %p329_p3 = scmp.lt.s32.totalorder (!%p280_p2), %s838_s9, 15  ;;  %920 = vmatprep.subr.bf16.mxu1 (!%p280_p2), %v941_v0  ;;  %v943_v2 = vld [vmem:[%s1134_s2] sm:$0xff] (!%p280_p2)   ;;  %v944_v3 = vld [vmem:[%s1134_s2 + $0x8] sm:$0xff] (!%p280_p2)  }
   0x7   : > { %921 = vmatpush3.bf16.msra.mxu1 (!%p280_p2), %v941_v0  ;;  %908 = vmatprep.subr.bf16.mxu0 (!%p280_p2), %v943_v2  ;;  %v855_v28 = vld [vmem:[%s1137_s5] ss:$0 sm:$0xff] (!%p280_p2) }
   0x8   : > { %922 = vmatprep.subr.bf16.mxu1 (!%p280_p2), %v942_v1  ;;  %909 = vmatpush3.bf16.msra.mxu0 (!%p280_p2), %v943_v2  ;;  %v1055_v32 = vld [vmem:[%s1135_s3] ss:$0 sm:$0xff] (!%p280_p2) }
   0x9   : > { %910 = vmatprep.subr.bf16.mxu0 (!%p280_p2), %v944_v3 }
   0xb   : > { %923 = vmatpush3.bf16.msra.mxu1 (!%p280_p2), %v942_v1 }
   0xc   : > { %911 = vmatpush3.bf16.msra.mxu0 (!%p280_p2), %v944_v3 }
   0xd   : > { %s1142_s9 = smov (!%p329_p3, %s838_s9), 15 }
   0xe   : > { %s839_s16 = sshll.u32 %s1142_s9, 3  ;;  %s1050_s25 = sshll.u32 %s1142_s9, 2 }
   0xf   : > { %s338_s19 = scalar_lea.vmem %s1133_s1, %s839_s16  ;;  %s1028_s22 = scalar_lea.vmem %s1132_s0, %s839_s16 }
  0x10   : > { %v371_v4 = vld [vmem:[%s338_s19] sm:$0xff]  ;;  %v372_v5 = vld [vmem:[%s338_s19 + $0x8] sm:$0xff]  ;;  %v373_v6 = vld [vmem:[%s338_s19 + $0x10] sm:$0xff]  ;;  %s1061_s10 = scalar_lea.vmem %s1139_s7, %s1050_s25  ;;  %s953_s9 = smov 96  }
  0x11   : > { %v379_v7 = vpack.c.bf16 %v372_v5, %v371_v4  ;;  %v374_v8 = vld [vmem:[%s338_s19 + $0x18] sm:$0xff]  ;;  %v375_v9 = vld [vmem:[%s338_s19 + $0x20] sm:$0xff]  ;;  %v376_v10 = vld [vmem:[%s338_s19 + $0x28] sm:$0xff]  ;;  %s1071_s13 = scalar_lea.vmem %s1138_s6, %s1050_s25  ;;  %s356_s16 = scalar_lea.vmem %s1140_s8, %s1050_s25 }
  0x12   : > { %v380_v11 = vpack.c.bf16 %v374_v8, %v373_v6  ;;  %v381_v12 = vpack.c.bf16 %v376_v10, %v375_v9  ;;  %v359_v13 = vld [vmem:[%s1028_s22] sm:$0xff]  ;;  %v360_v14 = vld [vmem:[%s1028_s22 + $0x8] sm:$0xff]  ;;  %v361_v15 = vld [vmem:[%s1028_s22 + $0x10] sm:$0xff] }
  0x13   : > { %924 = vmatprep.mubr.msk.bf16.mxu1 %vm406_vm0, %v379_v7  ;;  %v362_v16 = vld [vmem:[%s1028_s22 + $0x18] sm:$0xff]  ;;  %v367_v17 = vpack.c.bf16 %v360_v14, %v359_v13  ;;  %v363_v19 = vld [vmem:[%s1028_s22 + $0x20] sm:$0xff]  ;;  %v364_v20 = vld [vmem:[%s1028_s22 + $0x28] sm:$0xff] }
  0x14   : > { %925 = vmatmul.mubr.msk.bf16.vlgmr.msra.gmra.mrb[0].mxu1 %vm406_vm0, %v380_v11  ;;  %v368_v18 = vpack.c.bf16 %v362_v16, %v361_v15  ;;  %v377_v21 = vld [vmem:[%s338_s19 + $0x30] sm:$0xff]  ;;  %v378_v22 = vld [vmem:[%s338_s19 + $0x38] sm:$0xff]  ;;  %v369_v23 = vpack.c.bf16 %v364_v20, %v363_v19 }
  0x15   : > { %928 = vmatprep.mubr.msk.bf16.mxu1 %vm406_vm0, %v381_v12  ;;  %912 = vmatprep.mubr.msk.bf16.mxu0 %vm406_vm0, %v367_v17  ;;  %v382_v24 = vpack.c.bf16 %v378_v22, %v377_v21  ;;  %v365_v25 = vld [vmem:[%s1028_s22 + $0x30] sm:$0xff]  ;;  %v366_v26 = vld [vmem:[%s1028_s22 + $0x38] sm:$0xff] }
  0x16   : > { %913 = vmatmul.mubr.msk.bf16.vlgmr.msra.gmra.mrb[0].mxu0 %vm406_vm0, %v368_v18  ;;  %v370_v27 = vpack.c.bf16 %v366_v26, %v365_v25 }
  0x17   : > { %916 = vmatprep.mubr.msk.bf16.mxu0 %vm406_vm0, %v369_v23 }
  0x1c   : > { %929 = vmatmul.mubr.msk.bf16.gmra.mrb[4].mxu1 %vm406_vm0, %v382_v24 }
  0x1e   : > { %917 = vmatmul.mubr.msk.bf16.gmra.mrb[4].mxu0 %vm406_vm0, %v370_v27 }
  0xe7   : > { %v926_v29 = vpop.f32.mrb[0].mxu1 }
  0xe8   : > { %v562_v30 = vadd.f32 %v926_v29, %v855_v28  ;;  %v553_v31 = vpop.f32.mrb[1].mxu1 }
  0xe9   : > { %v554_v33 = vadd.f32 %v855_v28, %v553_v31  ;;  %v927_v34 = vpop.f32.mrb[2].mxu1  ;;  %v914_v38 = vpop.f32.mrb[0].mxu0 }
  0xea   : > { %v890_v35 = vpack.c.bf16 %v562_v30, %v562_v30  ;;  %v565_v36 = vadd.f32 %v927_v34, %v855_v28  ;;  %v556_v37 = vpop.f32.mrb[3].mxu1  ;;  %v462_v41 = vadd.f32 %v914_v38, %v1055_v32  ;;  %v453_v42 = vpop.f32.mrb[1].mxu0 }
  0xeb   : > { %v888_v39 = vpack.c.bf16 %v554_v33, %v554_v33  ;;  %v557_v40 = vadd.f32 %v855_v28, %v556_v37  ;;  %v454_v44 = vadd.f32 %v1055_v32, %v453_v42  ;;  %v915_v45 = vpop.f32.mrb[2].mxu0 }
  0xec   : > { %659 = vst.msk [vmem:[%s1061_s10 + $0x8] sm:$0xf] %vm616_vm1, %v890_v35  ;;  %v891_v43 = vpack.c.bf16 %v565_v36, %v565_v36  ;;  %669 = vrot.lane.b32.xlu1 %v890_v35, %s953_s9  ;;  %v882_v47 = vpack.c.bf16 %v462_v41, %v462_v41  ;;  %v465_v48 = vadd.f32 %v915_v45, %v1055_v32  ;;  %v456_v49 = vpop.f32.mrb[3].mxu0 }
  0xed   : > { %657 = vst.msk [vmem:[%s1061_s10] sm:$0xf] %vm616_vm1, %v888_v39  ;;  %v889_v46 = vpack.c.bf16 %v557_v40, %v557_v40  ;;  %665 = vrot.lane.b32.xlu0 %v888_v39, %s953_s9  ;;  %v880_v50 = vpack.c.bf16 %v454_v44, %v454_v44  ;;  %v457_v51 = vadd.f32 %v1055_v32, %v456_v49 }
  0xee   : > { %660 = vst.msk [vmem:[%s1061_s10 + $0xc] sm:$0xf] %vm616_vm1, %v891_v43  ;;  %619 = vst.msk [vmem:[%s1071_s13 + $0x8] sm:$0xf] %vm616_vm1, %v882_v47  ;;  %v883_v53 = vpack.c.bf16 %v465_v48, %v465_v48 }
  0xef   : > { %658 = vst.msk [vmem:[%s1061_s10 + $0x4] sm:$0xf] %vm616_vm1, %v889_v46  ;;  %v930_v52 = vpop.f32.mrb[4].mxu1  ;;  %617 = vst.msk [vmem:[%s1071_s13] sm:$0xf] %vm616_vm1, %v880_v50  ;;  %v881_v56 = vpack.c.bf16 %v457_v51, %v457_v51 }
  0xf0   : > { %v578_v54 = vadd.f32 %v930_v52, %v855_v28  ;;  %671 = vrot.lane.b32.xlu1 %v891_v43, %s953_s9  ;;  %v569_v55 = vpop.f32.mrb[5].mxu1  ;;  %620 = vst.msk [vmem:[%s1071_s13 + $0xc] sm:$0xf] %vm616_vm1, %v883_v53 }
  0xf1   : > { %v570_v57 = vadd.f32 %v855_v28, %v569_v55  ;;  %v931_v58 = vpop.f32.mrb[6].mxu1  ;;  %667 = vrot.lane.b32.xlu0 %v889_v46, %s953_s9  ;;  %618 = vst.msk [vmem:[%s1071_s13 + $0x4] sm:$0xf] %vm616_vm1, %v881_v56  ;;  %v918_v62 = vpop.f32.mrb[4].mxu0 }
  0xf2   : > { %v894_v59 = vpack.c.bf16 %v578_v54, %v578_v54  ;;  %v581_v60 = vadd.f32 %v931_v58, %v855_v28  ;;  %v572_v61 = vpop.f32.mrb[7].mxu1  ;;  %v478_v1 = vadd.f32 %v918_v62, %v1055_v32  ;;  %v469_v2 = vpop.f32.mrb[5].mxu0 }
  0xf3   : > { %v892_v63 = vpack.c.bf16 %v570_v57, %v570_v57  ;;  %v573_v0 = vadd.f32 %v855_v28, %v572_v61  ;;  %v470_v4 = vadd.f32 %v1055_v32, %v469_v2  ;;  %v919_v5 = vpop.f32.mrb[6].mxu0 }
  0xf4   : > { %663 = vst.msk [vmem:[%s1061_s10 + $0x18] sm:$0xf] %vm616_vm1, %v894_v59  ;;  %v895_v3 = vpack.c.bf16 %v581_v60, %v581_v60  ;;  %v886_v7 = vpack.c.bf16 %v478_v1, %v478_v1  ;;  %v481_v8 = vadd.f32 %v919_v5, %v1055_v32  ;;  %v472_v9 = vpop.f32.mrb[7].mxu0 }
  0xf5   : > { %661 = vst.msk [vmem:[%s1061_s10 + $0x10] sm:$0xf] %vm616_vm1, %v892_v63  ;;  %v893_v6 = vpack.c.bf16 %v573_v0, %v573_v0  ;;  %673 = vrot.lane.b32.xlu0 %v892_v63, %s953_s9  ;;  %v884_v10 = vpack.c.bf16 %v470_v4, %v470_v4  ;;  %v473_v11 = vadd.f32 %v1055_v32, %v472_v9 }
  0xf6   : > { %664 = vst.msk [vmem:[%s1061_s10 + $0x1c] sm:$0xf] %vm616_vm1, %v895_v3  ;;  %623 = vst.msk [vmem:[%s1071_s13 + $0x18] sm:$0xf] %vm616_vm1, %v886_v7  ;;  %v887_v12 = vpack.c.bf16 %v481_v8, %v481_v8 }
  0xf7   : > { %662 = vst.msk [vmem:[%s1061_s10 + $0x14] sm:$0xf] %vm616_vm1, %v893_v6  ;;  %675 = vrot.lane.b32.xlu1 %v893_v6, %s953_s9  ;;  %621 = vst.msk [vmem:[%s1071_s13 + $0x10] sm:$0xf] %vm616_vm1, %v884_v10  ;;  %v885_v13 = vpack.c.bf16 %v473_v11, %v473_v11 }
  0xf8   : > { %624 = vst.msk [vmem:[%s1071_s13 + $0x1c] sm:$0xf] %vm616_vm1, %v887_v12 }
  0xf9   : > { %677 = vrot.lane.b32.xlu0 %v894_v59, %s953_s9  ;;  %622 = vst.msk [vmem:[%s1071_s13 + $0x14] sm:$0xf] %vm616_vm1, %v885_v13 }
  0xfb   : > { %679 = vrot.lane.b32.xlu1 %v895_v3, %s953_s9 }
 0x15e   : > { %v670_v14 = vpop.permute.xlu1 %669 }
 0x15f   : > { %691 = vst.msk [vmem:[%s356_s16 + $0x8] sm:$0xf] %vm616_vm1, %v670_v14  ;;  %v666_v15 = vpop.permute.xlu0 %665 }
 0x160   : > { %689 = vst.msk [vmem:[%s356_s16] sm:$0xf] %vm616_vm1, %v666_v15 }
 0x162   : > { %v672_v16 = vpop.permute.xlu1 %671 }
 0x163   : > { %692 = vst.msk [vmem:[%s356_s16 + $0xc] sm:$0xf] %vm616_vm1, %v672_v16  ;;  %v668_v17 = vpop.permute.xlu0 %667 }
 0x164   : > { %690 = vst.msk [vmem:[%s356_s16 + $0x4] sm:$0xf] %vm616_vm1, %v668_v17 }
 0x167   : > { %v674_v18 = vpop.permute.xlu0 %673 }
 0x168   : > { %693 = vst.msk [vmem:[%s356_s16 + $0x10] sm:$0xf] %vm616_vm1, %v674_v18 }
 0x169   : > { %v676_v19 = vpop.permute.xlu1 %675 }
 0x16a   : > { %694 = vst.msk [vmem:[%s356_s16 + $0x14] sm:$0xf] %vm616_vm1, %v676_v19 }
 0x16b   : > { %v678_v20 = vpop.permute.xlu0 %677 }
 0x16c   : > { %695 = vst.msk [vmem:[%s356_s16 + $0x18] sm:$0xf] %vm616_vm1, %v678_v20 }
 0x16d   : > { %v680_v21 = vpop.permute.xlu1 %679 }
 0x16e   : > { %696 = vst.msk [vmem:[%s356_s16 + $0x1c] sm:$0xf] %vm616_vm1, %v680_v21 }
 0x16f PF: > { %s19_s27 = sadd.s32 1, %s951_s27  }
 0x170   : > { %p16_p4 = scmp.ge.s32.totalorder %s19_s27, 4  }
 0x172   :  { %18 = sbr.rel (!%p16_p4) target bundleno = 1 (0x1), region = 101 }

</bundles_post_ra>
